<compile_context>
chip_gen: v7x
topology: tpu7x:2x2x1
jax: 0.10.0
libtpu: 0.0.40
codegen_flags: <defaults>
</compile_context>

<pallas_src>
import functools
import math

import jax
import jax.numpy as jnp
from jax.experimental import pallas as pl
from jax.experimental.pallas import tpu as pltpu


# ----------------------------------------------------------------------------
# Small helpers.
# ----------------------------------------------------------------------------
def _round_up(a, b):
    return ((a + b - 1) // b) * b


def _pick_tile(dim, cap, quantum):
    """Largest multiple of `quantum` <= cap that divides `dim`; else full dim."""
    if dim <= cap:
        return dim
    t = (cap // quantum) * quantum
    while t >= quantum:
        if dim % t == 0:
            return t
        t -= quantum
    return dim


@functools.lru_cache(maxsize=1)
def _vmem_limit_bytes():
    # Generation-aware VMEM budget (v5e/v6e: 128 MiB physical, v7x: 64 MiB).
    try:
        return int(pltpu.get_tpu_info().vmem_capacity_bytes * 3 // 4)
    except Exception:  # pragma: no cover - fall back to compiler default
        return None


# ----------------------------------------------------------------------------
# Kernel 1: tiled matmul + bias (+ optional ReLU), bf16 MXU / f32 accumulate.
# ----------------------------------------------------------------------------
def _mm_bias_kernel(x_ref, w_ref, b_ref, o_ref, acc_ref, *, relu):
    @pl.when(pl.program_id(2) == 0)
    def _():
        acc_ref[...] = jnp.zeros_like(acc_ref)

    acc_ref[...] += jnp.dot(x_ref[...], w_ref[...],
                            preferred_element_type=jnp.float32)

    @pl.when(pl.program_id(2) == pl.num_programs(2) - 1)
    def _():
        out = acc_ref[...] + b_ref[...]
        if relu:
            out = jnp.maximum(out, 0.0)
        o_ref[...] = out.astype(o_ref.dtype)


def matmul_bias(x2d, w, bias, relu=False, out_dtype=jnp.bfloat16,
                tm_cap=1024, tn_cap=512, tk_cap=1024):
    """out[m, n] = act( sum_k x2d[m, k] * w[k, n] + bias[n] )."""
    M, K = x2d.shape
    K2, N = w.shape
    assert K == K2
    x2d = x2d.astype(jnp.bfloat16)
    w = w.astype(jnp.bfloat16)
    bias = bias.reshape(1, N).astype(jnp.float32)

    tn = _pick_tile(N, tn_cap, 128)
    tk = _pick_tile(K, tk_cap, 128)

    # M tile: largest multiple-of-8 tile <= cap that divides the 8-aligned M
    # (no padded-row waste beyond 8-row alignment); pad only as a last resort.
    Mp = _round_up(M, 8)
    tm = None
    t = min(Mp, (tm_cap // 8) * 8)
    while t >= 8:
        if Mp % t == 0:
            tm = t
            break
        t -= 8
    if tm is None:
        tm = min(Mp, (tm_cap // 8) * 8)
        Mp = _round_up(Mp, tm)
    # v7x megacore: make sure at least one parallel grid axis has >= 2 steps.
    if Mp // tm == 1 and N // tn == 1 and Mp >= 16 and (Mp // 2) % 8 == 0:
        tm = Mp // 2
    if Mp != M:
        x2d = jnp.pad(x2d, ((0, Mp - M), (0, 0)))

    cost = pl.CostEstimate(
        flops=2 * Mp * N * K,
        transcendentals=0,
        bytes_accessed=Mp * K * 2 + K * N * 2
        + Mp * N * jnp.dtype(out_dtype).itemsize + N * 4,
    )
    out = pl.pallas_call(
        functools.partial(_mm_bias_kernel, relu=relu),
        out_shape=jax.ShapeDtypeStruct((Mp, N), out_dtype),
        grid=(Mp // tm, N // tn, K // tk),
        in_specs=[
            pl.BlockSpec((tm, tk), lambda i, j, k: (i, k)),
            pl.BlockSpec((tk, tn), lambda i, j, k: (k, j)),
            pl.BlockSpec((1, tn), lambda i, j, k: (0, j)),
        ],
        out_specs=pl.BlockSpec((tm, tn), lambda i, j, k: (i, j)),
        scratch_shapes=[pltpu.VMEM((tm, tn), jnp.float32)],
        compiler_params=pltpu.CompilerParams(
            dimension_semantics=("parallel", "parallel", "arbitrary"),
            vmem_limit_bytes=_vmem_limit_bytes(),
        ),
        cost_estimate=cost,
    )(x2d, w, bias)
    return out if Mp == M else out[:M]


# ----------------------------------------------------------------------------
# Kernel 2: fused 3x3 conv (pad=1) + folded BN affine + ReLU, row-band tiled,
# dx taps packed into K, no HBM im2col, no f32 shifted-slice relayouts.
# Supports 1 or 2 channel-partitioned inputs so the [up, skip] concat is fused.
# ----------------------------------------------------------------------------
def _conv3x3_kernel(*refs, n_in, band, W, relu):
    x_refs = refs[:n_in]                   # each (1, H+2, W+2, Cin_k)  bf16
    w_refs = refs[n_in:2 * n_in]           # each (3, 3*Cin_k, Cout)    bf16
    s_ref = refs[2 * n_in]                 # (1, Cout) f32 folded BN scale
    b_ref = refs[2 * n_in + 1]             # (1, Cout) f32 folded BN shift
    o_ref = refs[2 * n_in + 2]             # (1, band, W, Cout)
    cout = o_ref.shape[-1]
    r0 = pl.program_id(1) * band           # first padded row used by this band

    acc = jnp.zeros((band * W, cout), jnp.float32)
    for k in range(n_in):
        xr, wr = x_refs[k], w_refs[k]
        cin = xr.shape[-1]
        # Load the (band+2)-row halo slab once per band.
        slab = xr[0, pl.ds(r0, band + 2), :, :]            # (band+2, W+2, Cin)
        # Pack the 3 dx taps into K on the bf16 input side (once per band).
        xsh = jnp.concatenate(
            [slab[:, 0:W, :], slab[:, 1:W + 1, :], slab[:, 2:W + 2, :]],
            axis=-1)                                       # (band+2, W, 3*Cin)
        for dy in range(3):
            x3 = xsh[dy:dy + band].reshape(band * W, 3 * cin)
            acc = acc + jnp.dot(x3, wr[dy],
                                preferred_element_type=jnp.float32)
    out = acc * s_ref[...] + b_ref[...]     # (1, Cout) broadcast: no (W, Cout)
    if relu:
        out = jnp.maximum(out, 0.0)
    o_ref[...] = out.reshape(1, band, W, cout).astype(o_ref.dtype)


def _pick_band(H, W, target_m=1024):
    """Largest divisor of H with band*W <= target_m (so M=band*W feeds MXU)."""
    best = 1
    for b in range(1, H + 1):
        if H % b == 0 and b * W <= max(target_m, W):
            best = b
    return best


def conv3x3_bn_relu(xs, ws, scale, bias, out_dtype=jnp.bfloat16, relu=True):
    """Fused 3x3 conv over channel-partitioned NHWC inputs + affine + ReLU."""
    n_in = len(xs)
    N, H, W, _ = xs[0].shape
    cout = ws[0].shape[-1]
    band = _pick_band(H, W)
    nb = H // band

    # One spatial SAME-pad in bf16 (single HBM copy, vs. 9x for im2col).
    xps = [jnp.pad(x.astype(jnp.bfloat16), ((0, 0), (1, 1), (1, 1), (0, 0)))
           for x in xs]
    ws = [w.astype(jnp.bfloat16) for w in ws]

    in_specs = []
    for xp in xps:
        cin = xp.shape[-1]
        # Block index ignores the band axis -> image is DMA'd once per n and
        # reused across all bands of that image.
        in_specs.append(
            pl.BlockSpec((1, H + 2, W + 2, cin), lambda n, b: (n, 0, 0, 0)))
    for w in ws:
        in_specs.append(pl.BlockSpec(w.shape, lambda n, b: (0, 0, 0)))
    in_specs.append(pl.BlockSpec((1, cout), lambda n, b: (0, 0)))
    in_specs.append(pl.BlockSpec((1, cout), lambda n, b: (0, 0)))

    flops = 2 * N * H * W * 9 * cout * sum(int(x.shape[-1]) for x in xs)
    bytes_acc = (sum(int(x.size) * 2 for x in xps)
                 + sum(int(w.size) * 2 for w in ws)
                 + N * H * W * cout * jnp.dtype(out_dtype).itemsize)
    cost = pl.CostEstimate(flops=flops, transcendentals=0,
                           bytes_accessed=bytes_acc)

    return pl.pallas_call(
        functools.partial(_conv3x3_kernel, n_in=n_in, band=band, W=W,
                          relu=relu),
        out_shape=jax.ShapeDtypeStruct((N, H, W, cout), out_dtype),
        grid=(N, nb),
        in_specs=in_specs,
        out_specs=pl.BlockSpec((1, band, W, cout), lambda n, b: (n, b, 0, 0)),
        compiler_params=pltpu.CompilerParams(
            dimension_semantics=("parallel", "parallel"),
            vmem_limit_bytes=_vmem_limit_bytes(),
        ),
        cost_estimate=cost,
    )(*xps, *ws,
      scale.reshape(1, cout).astype(jnp.float32),
      bias.reshape(1, cout).astype(jnp.float32))


# ----------------------------------------------------------------------------
# Plain-JAX glue (layout plumbing, bilinear fallback, BN folding).
# ----------------------------------------------------------------------------
def bilinear_align_corners(x, out_h, out_w):
    """x: (N, H, W, C) -> (N, out_h, out_w, C); F.interpolate(align_corners=True)."""
    N, H, W, C = x.shape
    if (H, W) == (out_h, out_w):
        return x
    ys = jnp.linspace(0.0, H - 1.0, out_h) if out_h > 1 else jnp.zeros((out_h,))
    xs = jnp.linspace(0.0, W - 1.0, out_w) if out_w > 1 else jnp.zeros((out_w,))
    y0 = jnp.floor(ys).astype(jnp.int32)
    x0 = jnp.floor(xs).astype(jnp.int32)
    y1 = jnp.minimum(y0 + 1, H - 1)
    x1 = jnp.minimum(x0 + 1, W - 1)
    wy = (ys - y0)[None, :, None, None]
    wx = (xs - x0)[None, None, :, None]
    a = x[:, y0][:, :, x0]
    b = x[:, y0][:, :, x1]
    c = x[:, y1][:, :, x0]
    d = x[:, y1][:, :, x1]
    top = a * (1 - wx) + b * wx
    bot = c * (1 - wx) + d * wx
    return top * (1 - wy) + bot * wy


def _fold_bn(conv_b, gamma, beta, mean, var, eps):
    s = gamma / jnp.sqrt(var + eps)
    return s, (conv_b - mean) * s + beta


def _taps3(w4d):
    """(Cout, Cin, 3, 3) -> (3 [dy], 3*Cin [dx*Cin + ci], Cout)."""
    cout, cin = w4d.shape[0], w4d.shape[1]
    return jnp.transpose(w4d, (2, 3, 1, 0)).reshape(3, 3 * cin, cout)


def decoder_block_forward(x_nchw, skip_nchw, p, eps=1e-5):
    # NCHW in/out (PyTorch convention); NHWC + bf16 internally.
    x = jnp.transpose(x_nchw, (0, 2, 3, 1)).astype(jnp.bfloat16)
    skip = jnp.transpose(skip_nchw, (0, 2, 3, 1)).astype(jnp.bfloat16)
    N, H, W, Cin = x.shape
    Cout = p["up_b"].shape[0]

    # --- ConvTranspose2d(k=2, s=2): one matmul with 4*Cout packed columns ---
    w_up = jnp.transpose(p["up_w"], (0, 2, 3, 1)).reshape(Cin, 4 * Cout)
    y = matmul_bias(x.reshape(N * H * W, Cin), w_up, jnp.tile(p["up_b"], 4),
                    out_dtype=jnp.bfloat16)
    # 2x2 spatial interleave (bf16 layout plumbing outside the kernel).
    # TODO(synk): write the deconv output directly in interleaved layout via a
    # dedicated output BlockSpec (removes one HBM round trip of this tensor).
    y = (y.reshape(N, H, W, 2, 2, Cout)
          .transpose(0, 1, 3, 2, 4, 5)
          .reshape(N, 2 * H, 2 * W, Cout))

    # --- skip_proj: 1x1 conv ---
    Ns, Hs, Ws, Cs = skip.shape
    w_sk = p["skip_w"].reshape(Cout, Cs).T
    s = matmul_bias(skip.reshape(Ns * Hs * Ws, Cs), w_sk, p["skip_b"],
                    out_dtype=jnp.bfloat16)
    s = s.reshape(Ns, Hs, Ws, Cout)
    if (Hs, Ws) != (2 * H, 2 * W):
        s = bilinear_align_corners(s.astype(jnp.float32), 2 * H, 2 * W
                                   ).astype(jnp.bfloat16)

    # --- conv1 over the (virtual) channel concat [y, s]: two K-partial tap
    #     accumulations in one kernel; the concat never hits HBM. ---
    w1 = p["conv1_w"]                                   # (Cout, 2*Cout, 3, 3)
    sc1, sh1 = _fold_bn(p["conv1_b"], p["bn1_g"], p["bn1_b"],
                        p["bn1_m"], p["bn1_v"], eps)
    z = conv3x3_bn_relu([y, s], [_taps3(w1[:, :Cout]), _taps3(w1[:, Cout:])],
                        sc1, sh1, out_dtype=jnp.bfloat16, relu=True)

    # --- conv2 + BN + ReLU (f32 output: module boundary) ---
    sc2, sh2 = _fold_bn(p["conv2_b"], p["bn2_g"], p["bn2_b"],
                        p["bn2_m"], p["bn2_v"], eps)
    out = conv3x3_bn_relu([z], [_taps3(p["conv2_w"])], sc2, sh2,
                          out_dtype=jnp.float32, relu=True)
    return jnp.transpose(out, (0, 3, 1, 2))             # back to NCHW, f32


# ----------------------------------------------------------------------------
# Deterministic parameter initialization (shapes per the PyTorch __init__).
# ----------------------------------------------------------------------------
def init_params(key, in_channels, skip_channels, out_channels):
    ks = jax.random.split(key, 12)

    def uinit(k, shape, fan_in):
        bound = 1.0 / math.sqrt(fan_in)
        return jax.random.uniform(k, shape, jnp.float32, -bound, bound)

    Cout = out_channels
    p = {
        # ConvTranspose2d(in, out, 2, 2): weight (Cin, Cout, 2, 2)
        "up_w": uinit(ks[0], (in_channels, Cout, 2, 2), in_channels * 4),
        "up_b": uinit(ks[1], (Cout,), in_channels * 4),
        # Conv2d(skip, out, 1)
        "skip_w": uinit(ks[2], (Cout, skip_channels, 1, 1), skip_channels),
        "skip_b": uinit(ks[3], (Cout,), skip_channels),
        # Conv2d(2*out, out, 3, pad=1)
        "conv1_w": uinit(ks[4], (Cout, 2 * Cout, 3, 3), 2 * Cout * 9),
        "conv1_b": uinit(ks[5], (Cout,), 2 * Cout * 9),
        # BatchNorm2d(out) -- eval mode
        "bn1_g": jax.random.uniform(ks[6], (Cout,), jnp.float32, 0.8, 1.2),
        "bn1_b": 0.1 * jax.random.normal(ks[7], (Cout,), jnp.float32),
        "bn1_m": 0.1 * jax.random.normal(ks[8], (Cout,), jnp.float32),
        "bn1_v": jax.random.uniform(ks[9], (Cout,), jnp.float32, 0.5, 1.5),
        # Conv2d(out, out, 3, pad=1)
        "conv2_w": uinit(ks[10], (Cout, Cout, 3, 3), Cout * 9),
        "conv2_b": uinit(ks[11], (Cout,), Cout * 9),
        # BatchNorm2d(out) -- eval mode
        "bn2_g": jnp.ones((Cout,), jnp.float32),
        "bn2_b": jnp.zeros((Cout,), jnp.float32),
        "bn2_m": jnp.zeros((Cout,), jnp.float32),
        "bn2_v": jnp.ones((Cout,), jnp.float32),
    }
    return p


if __name__ == "__main__":
    in_channels, skip_channels, out_channels = 8, 6, 8
    N, H, W = 2, 8, 8            # x spatial; upsampled to 16x16
    key = jax.random.PRNGKey(0)
    kx, ksk, kp = jax.random.split(key, 3)

    x = jax.random.normal(kx, (N, in_channels, H, W), jnp.float32)                # NCHW
    skip = jax.random.normal(ksk, (N, skip_channels, 2 * H, 2 * W), jnp.float32)  # NCHW
    params = init_params(kp, in_channels, skip_channels, out_channels)

    out = decoder_block_forward(x, skip, params)
    out = jax.block_until_ready(out)
    assert out.shape == (N, out_channels, 2 * H, 2 * W), out.shape
    assert bool(jnp.all(jnp.isfinite(out)))
    print("KERNEL_OK")
</pallas_src>

<mosaic_0001>
module attributes {stable_mosaic.version = 11 : i64} {
  func.func @_mm_bias_kernel(%arg0: i32, %arg1: i32, %arg2: i32, %arg3: memref<64x8xbf16, #tpu.memory_space<vmem>>, %arg4: memref<8x32xbf16, #tpu.memory_space<vmem>>, %arg5: memref<1x32xf32, #tpu.memory_space<vmem>>, %arg6: memref<64x32xbf16, #tpu.memory_space<vmem>>, %arg7: memref<64x32xf32, #tpu.memory_space<vmem>>) attributes {dimension_semantics = [#tpu.dimension_semantics<parallel>, #tpu.dimension_semantics<parallel>, #tpu.dimension_semantics<arbitrary>], iteration_bounds = array<i64: 2, 1, 1>, scalar_prefetch = 0 : i64, scratch_operands = 1 : i64, tpu.core_type = #tpu.core_type<tc>, window_params = [{transform_indices = @transform_0, window_bounds = array<i64: 64, 8>}, {transform_indices = @transform_1, window_bounds = array<i64: 8, 32>}, {transform_indices = @transform_2, window_bounds = array<i64: 1, 32>}, {transform_indices = @transform_3, window_bounds = array<i64: 64, 32>}]} {
    %c0_i32 = arith.constant 0 : i32
    %0 = arith.cmpi eq, %arg2, %c0_i32 : i32
    %1 = arith.extui %0 : i1 to i32
    %c0_i32_0 = arith.constant 0 : i32
    %2 = arith.cmpi ne, %1, %c0_i32_0 : i32
    scf.if %2 {
      %cst_10 = arith.constant 0.000000e+00 : f32
      %12 = vector.broadcast %cst_10 : f32 to vector<64x32xf32>
      %c0_11 = arith.constant 0 : index
      %c0_12 = arith.constant 0 : index
      %13 = vector.load %arg7[%c0_11, %c0_12] : memref<64x32xf32, #tpu.memory_space<vmem>>, vector<64x32xf32>
      tpu.vector_store %arg7[%c0_11, %c0_12], %12 {strides = array<i32>} : memref<64x32xf32, #tpu.memory_space<vmem>>, vector<64x32xf32>,
    } else {
    }
    %c0 = arith.constant 0 : index
    %c0_1 = arith.constant 0 : index
    %3 = vector.load %arg7[%c0, %c0_1] : memref<64x32xf32, #tpu.memory_space<vmem>>, vector<64x32xf32>
    %c0_2 = arith.constant 0 : index
    %c0_3 = arith.constant 0 : index
    %4 = vector.load %arg3[%c0_2, %c0_3] : memref<64x8xbf16, #tpu.memory_space<vmem>>, vector<64x8xbf16>
    %c0_4 = arith.constant 0 : index
    %c0_5 = arith.constant 0 : index
    %5 = vector.load %arg4[%c0_4, %c0_5] : memref<8x32xbf16, #tpu.memory_space<vmem>>, vector<8x32xbf16>
    %cst = arith.constant dense<0.000000e+00> : vector<64x32xf32>
    %6 = tpu.matmul %4, %5, %cst {dimension_numbers = #tpu.dot_dimension_numbers<[1], [0], [0], [1], [0, 0, 1, 1], [], []>} : vector<64x8xbf16>, vector<8x32xbf16>, vector<64x32xf32> -> vector<64x32xf32>
    %7 = arith.addf %3, %6 : vector<64x32xf32>
    %c0_6 = arith.constant 0 : index
    %c0_7 = arith.constant 0 : index
    %8 = vector.load %arg7[%c0_6, %c0_7] : memref<64x32xf32, #tpu.memory_space<vmem>>, vector<64x32xf32>
    tpu.vector_store %arg7[%c0_6, %c0_7], %7 {strides = array<i32>} : memref<64x32xf32, #tpu.memory_space<vmem>>, vector<64x32xf32>,
    %c0_i32_8 = arith.constant 0 : i32
    %9 = arith.cmpi eq, %arg2, %c0_i32_8 : i32
    %10 = arith.extui %9 : i1 to i32
    %c0_i32_9 = arith.constant 0 : i32
    %11 = arith.cmpi ne, %10, %c0_i32_9 : i32
    scf.if %11 {
      %c0_10 = arith.constant 0 : index
      %c0_11 = arith.constant 0 : index
      %12 = vector.load %arg7[%c0_10, %c0_11] : memref<64x32xf32, #tpu.memory_space<vmem>>, vector<64x32xf32>
      %c0_12 = arith.constant 0 : index
      %c0_13 = arith.constant 0 : index
      %13 = vector.load %arg5[%c0_12, %c0_13] : memref<1x32xf32, #tpu.memory_space<vmem>>, vector<1x32xf32>
      %14 = vector.broadcast %13 : vector<1x32xf32> to vector<64x32xf32>
      %15 = arith.addf %12, %14 : vector<64x32xf32>
      %16 = arith.truncf %15 : vector<64x32xf32> to vector<64x32xbf16>
      %c0_14 = arith.constant 0 : index
      %c0_15 = arith.constant 0 : index
      %17 = vector.load %arg6[%c0_14, %c0_15] : memref<64x32xbf16, #tpu.memory_space<vmem>>, vector<64x32xbf16>
      tpu.vector_store %arg6[%c0_14, %c0_15], %16 {strides = array<i32>} : memref<64x32xbf16, #tpu.memory_space<vmem>>, vector<64x32xbf16>,
    } else {
    }
    return
  }
  func.func @transform_0(%arg0: i32, %arg1: i32, %arg2: i32) -> (i32, i32) {
    %c0_i32 = arith.constant 0 : i32
    return %arg0, %arg2 : i32, i32
  }
  func.func @transform_1(%arg0: i32, %arg1: i32, %arg2: i32) -> (i32, i32) {
    %c0_i32 = arith.constant 0 : i32
    return %arg2, %arg1 : i32, i32
  }
  func.func @transform_2(%arg0: i32, %arg1: i32, %arg2: i32) -> (i32, i32) {
    %c0_i32 = arith.constant 0 : i32
    %c0_i32_0 = arith.constant 0 : i32
    return %c0_i32, %arg1 : i32, i32
  }
  func.func @transform_3(%arg0: i32, %arg1: i32, %arg2: i32) -> (i32, i32) {
    %c0_i32 = arith.constant 0 : i32
    return %arg0, %arg1 : i32, i32
  }
}

</mosaic_0001>

<bundles_post_ra>
// kernel: tpu_custom_call.1
= control target key start
LH: loop header
LB: loop body
LE: loop exit
PB: predicated region body
PF: predicated region fallthrough
CT: control target
= control target key end

     0   :  { %s713_s12 = smov 0   ;;  %s715_s13 = smov 0   ;;  %s786_s0 = inlined_call_operand.vmem [shape: bf16[128,8], index: 0, kind: input, shape index: {}]   ;;  %s787_s1 = inlined_call_operand.vmem [shape: bf16[8,32], index: 1, kind: input, shape index: {}]   ;;  %s788_s2 = inlined_call_operand.vmem [shape: f32[1,32], index: 2, kind: input, shape index: {}]   ;;  %s789_s3 = inlined_call_operand.vmem [shape: bf16[128,32], index: 3, kind: output, shape index: {}]  }
   0x1   :  { %s717_s14 = smov 0  }
   0x2 LB: > { %s32_s15 = sadd.s32 1, %s686_s13  ;;  %p588_p0 = scmp.ge.s32.totalorder %s690_s14, 1  ;;  %s690_s14 = sphi %s717_s14, %s13_s14   ;;  %s686_s13 = sphi %s715_s13, %s791_s13   ;;  %s682_s12 = sphi %s713_s12, %s790_s12  }
   0x3   : > { %p34_p1 = scmp.ge.s32.totalorder %s32_s15, 2  ;;  %p186_p2 = scmp.lt.s32.totalorder %s690_s14, 3 }
   0x5   : > { %s793_s15 = smov (%p34_p1, %s32_s15), 0  ;;  %p187_p3 = pnand %p588_p0, %p186_p2 }
   0x6   : > { %v284_v0 = vld [vmem:[%s787_s1] sm:$0xf] (!%p187_p3)  ;;  %vm318_vm0 = vcmask (!%p187_p3), 1043456   ;;  %s589_s18 = sshll.u32 (!%p187_p3), %s682_s12, 3  ;;  %vm259_vm1 = vcmask (!%p187_p3), 261120   ;;  %v692_v2 = vmov (!%p187_p3), 0.0  }
   0x7   : > { %190 = sbr.rel (%p187_p3) target bundleno = 250 (0xfa), region = 32  ;;  %637 = vmatprep.subr.msk.bf16.mxu0 (!%p187_p3), %vm318_vm0, %v284_v0  ;;  %638 = vmatprep.subr.msk.bf16.mxu1 (!%p187_p3), %vm318_vm0, %v284_v0  ;;  %v320_v1 = vsel (!%p187_p3), %vm318_vm0, %v284_v0, 0  ;;  %p227_p4 = scmp.lt.s32.totalorder (!%p187_p3), %s589_s18, 15  ;;  %262 = vst.msk [vmem:[#allocation2 + $0x10] sm:$0xff] (!%p187_p3), %vm259_vm1, %v692_v2  ;;  %260 = vst.msk [vmem:[#allocation2] sm:$0xff] (!%p187_p3), %vm259_vm1, %v692_v2  ;;  %vm305_vm2 = vcmask (!%p187_p3), 64512  }
   0x8   : > { %626 = vmatpush3.bf16.msra.mxu0 (!%p187_p3), %v320_v1  ;;  %636 = vmatpush3.bf16.msra.mxu1 (!%p187_p3), %v320_v1  ;;  %261 = vst.msk [vmem:[#allocation2 + $0x8] sm:$0xff] (!%p187_p3), %vm259_vm1, %v692_v2  ;;  %263 = vst.msk [vmem:[#allocation2 + $0x18] sm:$0xff] (!%p187_p3), %vm259_vm1, %v692_v2  ;;  %v601_v31 = vld [vmem:[%s788_s2] ss:$0 sm:$0xff] (!%p187_p3)  ;;  %vm462_vm3 = vcmask (!%p187_p3), 257024  }
   0x9   : > { %264 = vst.msk [vmem:[#allocation2 + $0x20] sm:$0xff] (!%p187_p3), %vm259_vm1, %v692_v2  ;;  %265 = vst.msk [vmem:[#allocation2 + $0x28] sm:$0xff] (!%p187_p3), %vm259_vm1, %v692_v2 }
   0xa   : > { %266 = vst.msk [vmem:[#allocation2 + $0x30] sm:$0xff] (!%p187_p3), %vm259_vm1, %v692_v2  ;;  %267 = vst.msk [vmem:[#allocation2 + $0x38] sm:$0xff] (!%p187_p3), %vm259_vm1, %v692_v2 }
   0xe   : > { %s795_s18 = smov (!%p227_p4, %s589_s18), 15  ;;  %v270_v7 = vld [vmem:[#allocation2 + $0x10] sm:$0xff]  ;;  %v268_v9 = vld [vmem:[#allocation2] sm:$0xff] }
   0xf   : > { %s590_s19 = sshll.u32 %s795_s18, 2  ;;  %v271_v12 = vld [vmem:[#allocation2 + $0x18] sm:$0xff]  ;;  %v269_v17 = vld [vmem:[#allocation2 + $0x8] sm:$0xff] }
  0x10   : > { %s233_s22 = scalar_lea.vmem %s786_s0, %s590_s19  ;;  %v272_v11 = vld [vmem:[#allocation2 + $0x20] sm:$0xff]  ;;  %v273_v22 = vld [vmem:[#allocation2 + $0x28] sm:$0xff]  ;;  %s252_s27 = scalar_lea.vmem %s789_s3, %s590_s19 }
  0x11   : > { %v664_v3 = vld [vmem:[%s233_s22] sm:$0xff]   ;;  %v665_v4 = vld [vmem:[%s233_s22 + $0x10] sm:$0xff]   ;;  %v666_v5 = vld [vmem:[%s233_s22 + $0x8] sm:$0xff]  }
  0x12   : > { %627 = vmatprep.mubr.msk.bf16.mxu0 %vm305_vm2, %v664_v3  ;;  %631 = vmatprep.mubr.msk.bf16.mxu1 %vm305_vm2, %v665_v4  ;;  %v667_v6 = vld [vmem:[%s233_s22 + $0x18] sm:$0xff]   ;;  %v274_v8 = vld [vmem:[#allocation2 + $0x30] sm:$0xff] }
  0x13   : > { %628 = vmatmul.mubr.msk.bf16.vlgmr.msra.gmra.mrb[0].mxu0 %vm305_vm2, %v666_v5  ;;  %632 = vmatmul.mubr.msk.bf16.vlgmr.msra.gmra.mrb[0].mxu1 %vm305_vm2, %v667_v6  ;;  %v275_v16 = vld [vmem:[#allocation2 + $0x38] sm:$0xff] }
  0xe6   : > { %v629_v10 = vpop.f32.mrb[0].mxu0  ;;  %v633_v14 = vpop.f32.mrb[0].mxu1 }
  0xe7   : > { %v389_v13 = vadd.f32 %v629_v10, %v270_v7  ;;  %v356_v15 = vpop.f32.mrb[1].mxu0  ;;  %v393_v18 = vadd.f32 %v633_v14, %v274_v8  ;;  %v372_v20 = vpop.f32.mrb[1].mxu1 }
  0xe8   : > { %v387_v19 = vadd.f32 %v356_v15, %v268_v9  ;;  %v630_v21 = vpop.f32.mrb[2].mxu0  ;;  %v391_v23 = vadd.f32 %v372_v20, %v272_v11  ;;  %v634_v25 = vpop.f32.mrb[2].mxu1 }
  0xe9   : > { %398 = vst.msk [vmem:[#allocation2 + $0x10] sm:$0xff] %vm259_vm1, %v389_v13  ;;  %v390_v24 = vadd.f32 %v630_v21, %v271_v12  ;;  %v359_v26 = vpop.f32.mrb[3].mxu0  ;;  %402 = vst.msk [vmem:[#allocation2 + $0x30] sm:$0xff] %vm259_vm1, %v393_v18  ;;  %v394_v27 = vadd.f32 %v634_v25, %v275_v16  ;;  %v375_v29 = vpop.f32.mrb[3].mxu1 }
  0xea   : > { %396 = vst.msk [vmem:[#allocation2] sm:$0xff] %vm259_vm1, %v387_v19  ;;  %v388_v28 = vadd.f32 %v359_v26, %v269_v17  ;;  %400 = vst.msk [vmem:[#allocation2 + $0x20] sm:$0xff] %vm259_vm1, %v391_v23  ;;  %v392_v30 = vadd.f32 %v375_v29, %v273_v22 }
  0xeb   : > { %399 = vst.msk [vmem:[#allocation2 + $0x18] sm:$0xff] %vm259_vm1, %v390_v24  ;;  %403 = vst.msk [vmem:[#allocation2 + $0x38] sm:$0xff] %vm259_vm1, %v394_v27 }
  0xec   : > { %397 = vst.msk [vmem:[#allocation2 + $0x8] sm:$0xff] %vm259_vm1, %v388_v28  ;;  %401 = vst.msk [vmem:[#allocation2 + $0x28] sm:$0xff] %vm259_vm1, %v392_v30 }
  0xf0   : > { %v409_v32 = vld [vmem:[#allocation2 + $0x10] sm:$0xff] }
  0xf1   : > { %v424_v33 = vadd.f32 %v601_v31, %v409_v32  ;;  %v413_v34 = vld [vmem:[#allocation2 + $0x30] sm:$0xff]  ;;  %v407_v35 = vld [vmem:[#allocation2] sm:$0xff] }
  0xf2   : > { %v428_v36 = vadd.f32 %v601_v31, %v413_v34  ;;  %v422_v37 = vadd.f32 %v601_v31, %v407_v35  ;;  %v411_v38 = vld [vmem:[#allocation2 + $0x20] sm:$0xff]  ;;  %v410_v39 = vld [vmem:[#allocation2 + $0x18] sm:$0xff] }
  0xf3   : > { %v614_v40 = vpack.c.bf16 %v424_v33, %v424_v33  ;;  %v426_v41 = vadd.f32 %v601_v31, %v411_v38  ;;  %v425_v42 = vadd.f32 %v601_v31, %v410_v39  ;;  %v414_v43 = vld [vmem:[#allocation2 + $0x38] sm:$0xff]  ;;  %v408_v44 = vld [vmem:[#allocation2 + $0x8] sm:$0xff] }
  0xf4   : > { %v618_v45 = vpack.c.bf16 %v428_v36, %v428_v36  ;;  %v612_v46 = vpack.c.bf16 %v422_v37, %v422_v37  ;;  %v429_v47 = vadd.f32 %v601_v31, %v414_v43  ;;  %v423_v48 = vadd.f32 %v601_v31, %v408_v44  ;;  %v412_v49 = vld [vmem:[#allocation2 + $0x28] sm:$0xff] }
  0xf5   : > { %465 = vst.msk [vmem:[%s252_s27 + $0x8] sm:$0xf] %vm462_vm3, %v614_v40  ;;  %v616_v50 = vpack.c.bf16 %v426_v41, %v426_v41  ;;  %v615_v51 = vpack.c.bf16 %v425_v42, %v425_v42  ;;  %v427_v52 = vadd.f32 %v601_v31, %v412_v49 }
  0xf6   : > { %469 = vst.msk [vmem:[%s252_s27 + $0x18] sm:$0xf] %vm462_vm3, %v618_v45  ;;  %463 = vst.msk [vmem:[%s252_s27] sm:$0xf] %vm462_vm3, %v612_v46  ;;  %v619_v53 = vpack.c.bf16 %v429_v47, %v429_v47  ;;  %v613_v54 = vpack.c.bf16 %v423_v48, %v423_v48 }
  0xf7   : > { %467 = vst.msk [vmem:[%s252_s27 + $0x10] sm:$0xf] %vm462_vm3, %v616_v50  ;;  %466 = vst.msk [vmem:[%s252_s27 + $0xc] sm:$0xf] %vm462_vm3, %v615_v51  ;;  %v617_v55 = vpack.c.bf16 %v427_v52, %v427_v52 }
  0xf8   : > { %470 = vst.msk [vmem:[%s252_s27 + $0x1c] sm:$0xf] %vm462_vm3, %v619_v53  ;;  %464 = vst.msk [vmem:[%s252_s27 + $0x4] sm:$0xf] %vm462_vm3, %v613_v54 }
  0xf9   : > { %468 = vst.msk [vmem:[%s252_s27 + $0x14] sm:$0xf] %vm462_vm3, %v617_v55 }
  0xfa PF: > { %s13_s14 = sadd.s32 1, %s690_s14   ;;  %s790_s12 = smov %s686_s13 }
  0xfb   : > { %p10_p5 = scmp.ge.s32.totalorder %s13_s14, 4   ;;  %s791_s13 = smov %s793_s15 }
  0xfd   :  { %12 = sbr.rel (!%p10_p5) target bundleno = 2 (0x2), region = 76 }

</bundles_post_ra>
